<compile_context>
chip_gen: v7x
topology: tpu7x:2x2x1
jax: 0.10.0
libtpu: 0.0.40
codegen_flags: <defaults>
</compile_context>

<pallas_src>
import functools

import jax
import jax.numpy as jnp
from jax.experimental import pallas as pl
from jax.experimental.pallas import tpu as pltpu


def _project3d_kernel(p_ref, pts_ref, out_ref, *, eps):
    """One (batch, row-tile) grid step.

    p_ref   : (B, 12)               SMEM  pre-scaled projection matrices
    pts_ref : (1, 4, tile_rows, C)  VMEM  homogeneous point planes x/y/z/w
    out_ref : (1, 2, tile_rows, C)  VMEM  normalized pixel coords (x, y)
    """
    b = pl.program_id(0)

    x = pts_ref[0, 0]                     # (tile_rows, C) dense vregs
    y = pts_ref[0, 1]
    z = pts_ref[0, 2]
    w = pts_ref[0, 3]

    # 12 scalar * dense-tile FMAs on the VPU; P scalars come from SMEM.
    cam_x = p_ref[b, 0] * x + p_ref[b, 1] * y + p_ref[b, 2] * z + p_ref[b, 3] * w
    cam_y = p_ref[b, 4] * x + p_ref[b, 5] * y + p_ref[b, 6] * z + p_ref[b, 7] * w
    cam_z = p_ref[b, 8] * x + p_ref[b, 9] * y + p_ref[b, 10] * z + p_ref[b, 11] * w

    # One exact reciprocal shared by both output rows (cheaper than 2 divides;
    # approx=True rejected to keep sub-pixel accuracy within test tolerance).
    inv_z = pl.reciprocal(cam_z + eps, approx=False)

    out_ref[0, 0] = (cam_x * inv_z - 1.0).astype(out_ref.dtype)
    out_ref[0, 1] = (cam_y * inv_z - 1.0).astype(out_ref.dtype)


def _choose_tiles(batch, n, vmem_data_budget=12 * 1024 * 1024):
    """Pick (lane width C, padded row count R, rows per grid step)."""
    cdiv = lambda a, b: -(-a // b)
    # Lane width: 512 when it fits, else the smallest multiple of 128 >= n.
    lane = 512 if n >= 512 else cdiv(n, 128) * 128
    rows = cdiv(n, lane)                                  # rows before rounding
    # Rows per step from a double-buffered VMEM data budget:
    #   2 buffers x (4 in + 2 out) planes x tile_rows x lane x 4 B
    budget_rows = vmem_data_budget // (2 * 6 * lane * 4)
    budget_rows = max(8, (budget_rows // 8) * 8)
    # Keep >= 4 total grid steps when possible so both v7x TCs get work.
    want_row_steps = max(1, cdiv(4, batch))
    rows_per_step = max(8, cdiv(cdiv(rows, want_row_steps), 8) * 8)
    tile_rows = min(budget_rows, rows_per_step)
    if tile_rows >= rows:
        tile_rows = rows                                  # full-extent row block
    rows_padded = cdiv(rows, tile_rows) * tile_rows
    return lane, rows_padded, tile_rows


def project_3d(points, K, T, height, width, eps=1e-7):
    """points: (B, 4, H*W); K, T: (B, 4, 4). Returns (B, H, W, 2) float32."""
    B, four, N = points.shape
    assert four == 4 and N == height * width

    # Hoist P = (K @ T)[:, :3, :] into XLA and fold the pixel normalization
    # into rows 0 (x: 2/(W-1)) and 1 (y: 2/(H-1)); row 2 (z) is untouched.
    P = jnp.matmul(K.astype(jnp.float32), T.astype(jnp.float32))[:, :3, :]
    scale = jnp.array([2.0 / (width - 1), 2.0 / (height - 1), 1.0],
                      jnp.float32).reshape(1, 3, 1)
    P_flat = (P * scale).reshape(B, 12)                   # SMEM scalar table

    C, R, tile_rows = _choose_tiles(B, N)
    n_pad = R * C

    # TODO(synk): if callers guarantee homogeneous w == 1, accept xyz (B,3,N)
    # and fold P[:, :, 3] in additively to cut input traffic 16 -> 12 B/point.
    pts = points.astype(jnp.float32)
    if n_pad != N:
        # Zero padding is benign: cam_z + eps == eps, output finite & discarded.
        pts = jnp.pad(pts, ((0, 0), (0, 0), (0, n_pad - N)))
    pts = pts.reshape(B, 4, R, C)                         # free (contiguous)

    kernel = functools.partial(_project3d_kernel, eps=float(eps))

    cost = pl.CostEstimate(
        flops=24 * B * n_pad,                 # 12 mul + 9 add + epilogue / point
        transcendentals=B * n_pad,            # one reciprocal per point
        bytes_accessed=B * n_pad * (16 + 8) + B * 48,
    )

    pix = pl.pallas_call(
        kernel,
        out_shape=jax.ShapeDtypeStruct((B, 2, R, C), jnp.float32),
        grid=(B, R // tile_rows),
        in_specs=[
            pl.BlockSpec(memory_space=pltpu.MemorySpace.SMEM),          # P (B,12)
            pl.BlockSpec((1, 4, tile_rows, C), lambda b, r: (b, 0, r, 0)),
        ],
        out_specs=pl.BlockSpec((1, 2, tile_rows, C), lambda b, r: (b, 0, r, 0)),
        compiler_params=pltpu.CompilerParams(
            dimension_semantics=("parallel", "parallel"),
            vmem_limit_bytes=32 * 1024 * 1024),
        cost_estimate=cost,
    )(P_flat, pts)

    # Layout glue matching .view(B,2,H,W).permute(0,2,3,1) in PyTorch.
    # TODO(synk): fuse this channel-last permute into the consumer (e.g. the
    # grid_sample that typically follows Project3D) to avoid one extra HBM pass.
    pix = pix.reshape(B, 2, n_pad)[:, :, :N]
    return pix.reshape(B, 2, height, width).transpose(0, 2, 3, 1)


def _reference(points, K, T, height, width, eps=1e-7):
    B = points.shape[0]
    P = jnp.matmul(K, T)[:, :3, :]
    cam = jnp.matmul(P, points)
    pix = cam[:, :2, :] / (cam[:, 2:3, :] + eps)
    pix = pix.reshape(B, 2, height, width).transpose(0, 2, 3, 1)
    pix = pix.at[..., 0].divide(width - 1)
    pix = pix.at[..., 1].divide(height - 1)
    return (pix - 0.5) * 2.0


if __name__ == "__main__":
    def make_inputs(key, B, H, W):
        k_pts, k_K, k_T = jax.random.split(key, 3)
        N = H * W
        xyz = jax.random.normal(k_pts, (B, 3, N), dtype=jnp.float32)
        points = jnp.concatenate([xyz, jnp.ones((B, 1, N), jnp.float32)], axis=1)
        K = jnp.tile(jnp.array([[float(W), 0.0, W / 2.0, 0.0],
                                [0.0, float(H), H / 2.0, 0.0],
                                [0.0, 0.0, 1.0, 0.0],
                                [0.0, 0.0, 0.0, 1.0]], jnp.float32), (B, 1, 1))
        K = K + 0.01 * jax.random.normal(k_K, (B, 4, 4), dtype=jnp.float32)
        T = jnp.tile(jnp.eye(4, dtype=jnp.float32), (B, 1, 1))
        T = T.at[:, :3, 3].set(
            jax.random.normal(k_T, (B, 3), dtype=jnp.float32) * 0.1)
        T = T.at[:, 2, 3].add(5.0)      # push points in front of the camera
        return points, K, T

    key = jax.random.PRNGKey(0)
    k1, k2 = jax.random.split(key)

    # Case 1: N is a multiple of 128 (no padding path).
    B, H, W = 2, 16, 16
    points, K, T = make_inputs(k1, B, H, W)
    out = jax.block_until_ready(project_3d(points, K, T, H, W))
    ref = _reference(points, K, T, H, W)
    assert out.shape == (B, H, W, 2)
    assert jnp.allclose(out, ref, atol=1e-4, rtol=1e-4)

    # Case 2: N not a multiple of 128 (exercises the zero-padding path).
    B2, H2, W2 = 2, 12, 20
    points2, K2, T2 = make_inputs(k2, B2, H2, W2)
    out2 = jax.block_until_ready(project_3d(points2, K2, T2, H2, W2))
    ref2 = _reference(points2, K2, T2, H2, W2)
    assert out2.shape == (B2, H2, W2, 2)
    assert jnp.allclose(out2, ref2, atol=1e-4, rtol=1e-4)

    print("KERNEL_OK")
</pallas_src>

<mosaic_0001>
module attributes {stable_mosaic.version = 11 : i64} {
  func.func @_project3d_kernel(%arg0: i32, %arg1: i32, %arg2: memref<2x12xf32, #tpu.memory_space<smem>>, %arg3: memref<1x4x1x256xf32, #tpu.memory_space<vmem>>, %arg4: memref<1x2x1x256xf32, #tpu.memory_space<vmem>>) attributes {dimension_semantics = [#tpu.dimension_semantics<parallel>, #tpu.dimension_semantics<parallel>], iteration_bounds = array<i64: 2, 1>, scalar_prefetch = 0 : i64, scratch_operands = 0 : i64, tpu.core_type = #tpu.core_type<tc>, window_params = [{transform_indices = @transform_0, window_bounds = array<i64: 2, 12>}, {transform_indices = @transform_1, window_bounds = array<i64: 1, 4, 1, 256>}, {transform_indices = @transform_2, window_bounds = array<i64: 1, 2, 1, 256>}]} {
    %c0 = arith.constant 0 : index
    %c0_0 = arith.constant 0 : index
    %c0_1 = arith.constant 0 : index
    %c0_2 = arith.constant 0 : index
    %0 = vector.load %arg3[%c0, %c0_0, %c0_1, %c0_2] : memref<1x4x1x256xf32, #tpu.memory_space<vmem>>, vector<1x1x1x256xf32>
    %1 = vector.shape_cast %0 : vector<1x1x1x256xf32> to vector<1x256xf32>
    %c0_3 = arith.constant 0 : index
    %c1 = arith.constant 1 : index
    %c0_4 = arith.constant 0 : index
    %c0_5 = arith.constant 0 : index
    %2 = vector.load %arg3[%c0_3, %c1, %c0_4, %c0_5] : memref<1x4x1x256xf32, #tpu.memory_space<vmem>>, vector<1x1x1x256xf32>
    %3 = vector.shape_cast %2 : vector<1x1x1x256xf32> to vector<1x256xf32>
    %c0_6 = arith.constant 0 : index
    %c2 = arith.constant 2 : index
    %c0_7 = arith.constant 0 : index
    %c0_8 = arith.constant 0 : index
    %4 = vector.load %arg3[%c0_6, %c2, %c0_7, %c0_8] : memref<1x4x1x256xf32, #tpu.memory_space<vmem>>, vector<1x1x1x256xf32>
    %5 = vector.shape_cast %4 : vector<1x1x1x256xf32> to vector<1x256xf32>
    %c0_9 = arith.constant 0 : index
    %c3 = arith.constant 3 : index
    %c0_10 = arith.constant 0 : index
    %c0_11 = arith.constant 0 : index
    %6 = vector.load %arg3[%c0_9, %c3, %c0_10, %c0_11] : memref<1x4x1x256xf32, #tpu.memory_space<vmem>>, vector<1x1x1x256xf32>
    %7 = vector.shape_cast %6 : vector<1x1x1x256xf32> to vector<1x256xf32>
    %8 = arith.index_cast %arg0 : i32 to index
    %c0_12 = arith.constant 0 : index
    %9 = memref.load %arg2[%8, %c0_12] : memref<2x12xf32, #tpu.memory_space<smem>>
    %10 = vector.broadcast %9 : f32 to vector<1x256xf32>
    %11 = arith.mulf %10, %1 : vector<1x256xf32>
    %12 = arith.index_cast %arg0 : i32 to index
    %c1_13 = arith.constant 1 : index
    %13 = memref.load %arg2[%12, %c1_13] : memref<2x12xf32, #tpu.memory_space<smem>>
    %14 = vector.broadcast %13 : f32 to vector<1x256xf32>
    %15 = arith.mulf %14, %3 : vector<1x256xf32>
    %16 = arith.addf %11, %15 : vector<1x256xf32>
    %17 = arith.index_cast %arg0 : i32 to index
    %c2_14 = arith.constant 2 : index
    %18 = memref.load %arg2[%17, %c2_14] : memref<2x12xf32, #tpu.memory_space<smem>>
    %19 = vector.broadcast %18 : f32 to vector<1x256xf32>
    %20 = arith.mulf %19, %5 : vector<1x256xf32>
    %21 = arith.addf %16, %20 : vector<1x256xf32>
    %22 = arith.index_cast %arg0 : i32 to index
    %c3_15 = arith.constant 3 : index
    %23 = memref.load %arg2[%22, %c3_15] : memref<2x12xf32, #tpu.memory_space<smem>>
    %24 = vector.broadcast %23 : f32 to vector<1x256xf32>
    %25 = arith.mulf %24, %7 : vector<1x256xf32>
    %26 = arith.addf %21, %25 : vector<1x256xf32>
    %27 = arith.index_cast %arg0 : i32 to index
    %c4 = arith.constant 4 : index
    %28 = memref.load %arg2[%27, %c4] : memref<2x12xf32, #tpu.memory_space<smem>>
    %29 = vector.broadcast %28 : f32 to vector<1x256xf32>
    %30 = arith.mulf %29, %1 : vector<1x256xf32>
    %31 = arith.index_cast %arg0 : i32 to index
    %c5 = arith.constant 5 : index
    %32 = memref.load %arg2[%31, %c5] : memref<2x12xf32, #tpu.memory_space<smem>>
    %33 = vector.broadcast %32 : f32 to vector<1x256xf32>
    %34 = arith.mulf %33, %3 : vector<1x256xf32>
    %35 = arith.addf %30, %34 : vector<1x256xf32>
    %36 = arith.index_cast %arg0 : i32 to index
    %c6 = arith.constant 6 : index
    %37 = memref.load %arg2[%36, %c6] : memref<2x12xf32, #tpu.memory_space<smem>>
    %38 = vector.broadcast %37 : f32 to vector<1x256xf32>
    %39 = arith.mulf %38, %5 : vector<1x256xf32>
    %40 = arith.addf %35, %39 : vector<1x256xf32>
    %41 = arith.index_cast %arg0 : i32 to index
    %c7 = arith.constant 7 : index
    %42 = memref.load %arg2[%41, %c7] : memref<2x12xf32, #tpu.memory_space<smem>>
    %43 = vector.broadcast %42 : f32 to vector<1x256xf32>
    %44 = arith.mulf %43, %7 : vector<1x256xf32>
    %45 = arith.addf %40, %44 : vector<1x256xf32>
    %46 = arith.index_cast %arg0 : i32 to index
    %c8 = arith.constant 8 : index
    %47 = memref.load %arg2[%46, %c8] : memref<2x12xf32, #tpu.memory_space<smem>>
    %48 = vector.broadcast %47 : f32 to vector<1x256xf32>
    %49 = arith.mulf %48, %1 : vector<1x256xf32>
    %50 = arith.index_cast %arg0 : i32 to index
    %c9 = arith.constant 9 : index
    %51 = memref.load %arg2[%50, %c9] : memref<2x12xf32, #tpu.memory_space<smem>>
    %52 = vector.broadcast %51 : f32 to vector<1x256xf32>
    %53 = arith.mulf %52, %3 : vector<1x256xf32>
    %54 = arith.addf %49, %53 : vector<1x256xf32>
    %55 = arith.index_cast %arg0 : i32 to index
    %c10 = arith.constant 10 : index
    %56 = memref.load %arg2[%55, %c10] : memref<2x12xf32, #tpu.memory_space<smem>>
    %57 = vector.broadcast %56 : f32 to vector<1x256xf32>
    %58 = arith.mulf %57, %5 : vector<1x256xf32>
    %59 = arith.addf %54, %58 : vector<1x256xf32>
    %60 = arith.index_cast %arg0 : i32 to index
    %c11 = arith.constant 11 : index
    %61 = memref.load %arg2[%60, %c11] : memref<2x12xf32, #tpu.memory_space<smem>>
    %62 = vector.broadcast %61 : f32 to vector<1x256xf32>
    %63 = arith.mulf %62, %7 : vector<1x256xf32>
    %64 = arith.addf %59, %63 : vector<1x256xf32>
    %cst = arith.constant 1.000000e-07 : f32
    %65 = vector.broadcast %cst : f32 to vector<1x256xf32>
    %66 = arith.addf %64, %65 : vector<1x256xf32>
    %67 = tpu.reciprocal %66 : vector<1x256xf32> -> vector<1x256xf32>
    %68 = arith.mulf %26, %67 : vector<1x256xf32>
    %cst_16 = arith.constant 1.000000e+00 : f32
    %69 = vector.broadcast %cst_16 : f32 to vector<1x256xf32>
    %70 = arith.subf %68, %69 : vector<1x256xf32>
    %c0_17 = arith.constant 0 : index
    %c0_18 = arith.constant 0 : index
    %c0_19 = arith.constant 0 : index
    %c0_20 = arith.constant 0 : index
    %71 = vector.load %arg4[%c0_17, %c0_18, %c0_19, %c0_20] : memref<1x2x1x256xf32, #tpu.memory_space<vmem>>, vector<1x1x1x256xf32>
    %72 = vector.shape_cast %71 : vector<1x1x1x256xf32> to vector<1x256xf32>
    %73 = vector.shape_cast %70 : vector<1x256xf32> to vector<1x1x1x256xf32>
    tpu.vector_store %arg4[%c0_17, %c0_18, %c0_19, %c0_20], %73 {strides = array<i32>} : memref<1x2x1x256xf32, #tpu.memory_space<vmem>>, vector<1x1x1x256xf32>,
    %74 = arith.mulf %45, %67 : vector<1x256xf32>
    %cst_21 = arith.constant 1.000000e+00 : f32
    %75 = vector.broadcast %cst_21 : f32 to vector<1x256xf32>
    %76 = arith.subf %74, %75 : vector<1x256xf32>
    %c0_22 = arith.constant 0 : index
    %c1_23 = arith.constant 1 : index
    %c0_24 = arith.constant 0 : index
    %c0_25 = arith.constant 0 : index
    %77 = vector.load %arg4[%c0_22, %c1_23, %c0_24, %c0_25] : memref<1x2x1x256xf32, #tpu.memory_space<vmem>>, vector<1x1x1x256xf32>
    %78 = vector.shape_cast %77 : vector<1x1x1x256xf32> to vector<1x256xf32>
    %79 = vector.shape_cast %76 : vector<1x256xf32> to vector<1x1x1x256xf32>
    tpu.vector_store %arg4[%c0_22, %c1_23, %c0_24, %c0_25], %79 {strides = array<i32>} : memref<1x2x1x256xf32, #tpu.memory_space<vmem>>, vector<1x1x1x256xf32>,
    return
  }
  func.func @transform_0(%arg0: i32, %arg1: i32) -> (i32, i32) {
    %c0_i32 = arith.constant 0 : i32
    %c0_i32_0 = arith.constant 0 : i32
    %c0_i32_1 = arith.constant 0 : i32
    return %c0_i32, %c0_i32_0 : i32, i32
  }
  func.func @transform_1(%arg0: i32, %arg1: i32) -> (i32, i32, i32, i32) {
    %c0_i32 = arith.constant 0 : i32
    %c0_i32_0 = arith.constant 0 : i32
    %c0_i32_1 = arith.constant 0 : i32
    return %arg0, %c0_i32, %arg1, %c0_i32_0 : i32, i32, i32, i32
  }
  func.func @transform_2(%arg0: i32, %arg1: i32) -> (i32, i32, i32, i32) {
    %c0_i32 = arith.constant 0 : i32
    %c0_i32_0 = arith.constant 0 : i32
    %c0_i32_1 = arith.constant 0 : i32
    return %arg0, %c0_i32, %arg1, %c0_i32_0 : i32, i32, i32, i32
  }
}

</mosaic_0001>

<bundles_post_ra>
// kernel: tpu_custom_call.1
= control target key start
LH: loop header
LB: loop body
LE: loop exit
PB: predicated region body
PF: predicated region fallthrough
CT: control target
= control target key end

     0   :  { %s868_s0 = inlined_call_operand.hbm [shape: f32[2,12], index: 0, kind: input, shape index: {}]   ;;  %s869_s1 = inlined_call_operand.hbm [shape: f32[2,4,1,256], index: 1, kind: input, shape index: {}]   ;;  %s870_s2 = inlined_call_operand.hbm [shape: f32[2,2,1,256], index: 2, kind: output, shape index: {}]  }
   0x1   :  { %875 = sst [smem:[#allocation11_spill]] %s868_s0 }
   0x2   :  { %7 = vsyncpa [#allocation5], 0 }
   0x3   :  { %8 = vsyncpa [#allocation3], 0 }
   0x4   :  { %10 = vsyncpa [#allocation3 + $0x1], 0 }
   0x5   :  { %11 = vsyncpa [#allocation4], 0 }
   0x6   :  { %13 = vsyncpa [#allocation4 + $0x1], 0  ;;  %s642_s9 = smov 0   ;;  %s644_s10 = smov 0  }
   0x7   :  { %s646_s11 = smov 0   ;;  %s648_s12 = smov 0  }
   0x8   :  { %s650_s13 = smov 0   ;;  %s652_s14 = smov 0  }
   0x9 LB: > { %s384_s15 = sadd.s32 4294967295, %s618_s14   ;;  %s385_s16 = sadd.s32 4294967294, %s618_s14   ;;  %s618_s14 = sphi %s652_s14, %s19_s14   ;;  %s614_s13 = sphi %s650_s13, %s892_s13   ;;  %s610_s12 = sphi %s648_s12, %s891_s12   ;;  %s606_s11 = sphi %s646_s11, %s890_s11   ;;  %s602_s10 = sphi %s644_s10, %s889_s10   ;;  %s598_s9 = sphi %s642_s9, %s888_s9  }
   0xa   : > { %s61_s17 = sadd.s32 1, %s606_s11  ;;  %p68_p0 = scmp.ne.s32.totalorder %s606_s11, %s602_s10 }
   0xb   : > { %p69_p1 = scmp.eq.s32.totalorder %s618_s14, 0  ;;  %p74_p2 = scmp.ne.s32.totalorder %s602_s10, %s598_s9 }
   0xc   : > { %p680_p3 = scmp.eq.s32.totalorder %s384_s15, 0  ;;  %p100_p4 = scmp.eq.s32.totalorder %s384_s15, 1 }
   0xd   : > { %p70_p5 = por %p69_p1, %p68_p0  ;;  %p106_p6 = scmp.eq.s32.totalorder %s385_s16, 1 }
   0xe   : > { %s876_s18 = scalar_select %p680_p3, 1, 0 }
   0xf   : > { %p686_p7 = por %p680_p3, %p74_p2  ;;  %p690_p8 = por %p100_p4, %p68_p0 }
  0x10   : > { %p694_p9 = por %p106_p6, %p74_p2  ;;  %p386_p10 = scmp.ge.s32.totalorder %s618_s14, 1 }
  0x11   : > { %s877_s19 = scalar_select %p686_p7, 1, 0 }
  0x12   : > { %s878_s20 = scalar_select %p690_p8, 1, 0 }
  0x13   : > { %s879_s21 = scalar_select %p694_p9, 1, 0 }
  0x14   : > { %p113_p11 = scmp.lt.s32.totalorder %s618_s14, 3  ;;  %p431_p1 = scmp.lt.s32.totalorder %s618_s14, 2 }
  0x15   : > { %s135_s23 = sand.u32 1, %s606_s11   ;;  %s31_s25 = sadd.s32 1, %s614_s13 }
  0x16   : > { %p701_p13 = pnand %p386_p10, %p113_p11  ;;  %p709_p0 = pnand %p431_p1, %p70_p5 }
  0x17   : > { %s389_s26 = sshll.u32 %s135_s23, 3  ;;  %p33_p4 = scmp.ge.s32.totalorder %s31_s25, 2 }
  0x18   : > { %p418_p7 = pneg %p701_p13  ;;  %s882_s0 = sld [smem:[#allocation11_spill]] }
  0x1a   : > { %p419_p2 = pnand %p418_p7, %p680_p3 }
  0x1c   : > { %p491_p10 = pneg %p419_p2 }
  0x1e   : > { %s489_s29 = scalar_lea.hbm %s882_s0, 32 }
  0x1f   : > { %p490_p6 = scmp.ne.s32.totalorder %s882_s0, %s489_s29  ;;  %p496_p5 = scmp.lt.u32.totalorder %s489_s29, %s882_s0 }
  0x21   : > { %p492_p11 = pnand %p491_p10, %p490_p6 }
  0x23   : > { %p493_p12 = pneg %p492_p11 }
  0x25   : > { %p498_p1 = pnand %p496_p5, %p493_p12 }
  0x27   : > { %501 = shalt.err (!%p498_p1)
}
  0x28   : > { %s620_s6 = smov [#allocation2]   ;;  %s894_s25 = smov (%p33_p4, %s31_s25), 0 }
  0x29   : > { %421 = dma.hbm_to_smem (!%p419_p2), %s882_s0, 32, %s620_s6, [#allocation5]  }
  0x2a   : > { %s408_s15 = sshll.u32 %s614_s13, 7  ;;  %s56_s16 = ssub.s32 %s614_s13, %s894_s25 }
  0x2b   : > { %s736_s29 = scalar_lea.hbm %s869_s1, %s408_s15  ;;  %p59_p7 = scmp.eq.s32.totalorder %s56_s16, 0 }
  0x2c   : > { %s139_s30 = scalar_lea.vmem [#allocation6], %s389_s26  ;;  %s745_s5 = scalar_lea.sflag [#allocation3], %s135_s23 }
  0x2d   : > { %s148_s3 = sshll.u32 %s139_s30, 4  ;;  %s502_s6 = scalar_lea.hbm %s736_s29, 128  ;;  %s738_s3 = int_to_ptr.vmem [resolvable:$true] %s148_s3 }
  0x2e   : > { %s743_s4 = scalar_select %p59_p7, %s606_s11, %s61_s17  }
  0x2f   : > { %p503_p12 = scmp.ne.s32.totalorder %s736_s29, %s502_s6  ;;  %p504_p2 = pneg %p709_p0 }
  0x30   : > { %s507_s26 = scalar_lea.hbm %s869_s1, 256  ;;  %p508_p10 = scmp.lt.u32.totalorder %s736_s29, %s869_s1 }
  0x31   : > { %p505_p4 = pnand %p504_p2, %p503_p12  ;;  %p509_p11 = scmp.lt.u32.totalorder %s507_s26, %s502_s6 }
  0x32   : > { %p511_p1 = scmp.lt.u32.totalorder %s502_s6, %s736_s29 }
  0x33   : > { %p506_p6 = pneg %p505_p4  ;;  %p510_p5 = por %p509_p11, %p508_p10 }
  0x35   : > { %p512_p7 = por %p511_p1, %p510_p5 }
  0x37   : > { %p513_p9 = pnand %p512_p7, %p506_p6 }
  0x39   : > { %516 = shalt.err (!%p513_p9)
}
  0x3a   : > { %s517_s17 = scalar_lea.vmem %s738_s3, 128  ;;  %s621_s23 = smov [#allocation6]  }
  0x3b   : > { %p518_p12 = scmp.ne.s32.totalorder %s738_s3, %s517_s17  ;;  %s522_s27 = sshll.u32 %s621_s23, 4  ;;  %s523_s27 = int_to_ptr.vmem [resolvable:$false] %s522_s27 }
  0x3c   : > { %s524_s28 = scalar_lea.vmem %s523_s27, 256  ;;  %p525_p3 = scmp.lt.s32.totalorder %s738_s3, %s523_s27 }
  0x3d   : > { %p520_p4 = pnand %p518_p12, %p504_p2  ;;  %p526_p10 = scmp.lt.s32.totalorder %s524_s28, %s517_s17 }
  0x3f   : > { %p521_p8 = pneg %p520_p4  ;;  %p527_p11 = por %p526_p10, %p525_p3 }
  0x41   : > { %p528_p5 = pnand %p527_p11, %p521_p8 }
  0x43   : > { %531 = shalt.err (!%p528_p5)
}
  0x44   : > { %s622_s30 = smov 32   ;;  %s623_s6 = smov 2  }
  0x45   : > { %425 = dma.hbm_to_vmem [thread:$0]  (!%p709_p0), %s736_s29, 128, %s738_s3, %s745_s5, %s622_s30, %s622_s30, %s623_s6  }
  0x46   : > { %160 = sbr.rel (%p701_p13) target bundleno = 135 (0x87), region = 28  ;;  %p883_p9 = scmp.ne.s32.totalorder (!%p701_p13), %s876_s18, 0 }
  0x4d   : > { %585 = dma.done.wait (%p883_p9), [#allocation5], 32  }
  0x4e   : > { %587 = vsyncadd (%p883_p9), [#allocation5], 4294967264  ;;  %s780_s7 = sand.u32 1, %s602_s10   ;;  %p884_p3 = scmp.ne.s32.totalorder %s877_s19, 0 }
  0x4f   : > { %s394_s8 = sshll.u32 %s780_s7, 3  ;;  %s167_s26 = scalar_lea.sflag [#allocation3], %s780_s7 }
  0x50   : > { %s170_s15 = scalar_lea.vmem [#allocation6], %s394_s8 }
  0x51   : > { %589 = dma.done.wait (%p884_p3), %s167_s26, 128  }
  0x52   : > { %591 = vsyncadd (%p884_p3), %s167_s26, 4294967168 }
  0x53   : > { %175 = sfence }
  0x54   : > { %s789_s22 = sshll.u32 %s610_s12, 7  ;;  %v192_v0 = vld [vmem:[%s170_s15] sm:$0x3]  ;;  %v396_v1 = vld [vmem:[%s170_s15 + $0x2] sm:$0x3]  ;;  %v260_v38 = vlaneseq  ;;  %p885_p13 = scmp.ne.s32.totalorder %s878_s20, 0 }
  0x55   : > { %s792_s18 = sld [smem:[#allocation2 + %s789_s22]]  ;;  %s203_s24 = sadd.s32 1, %s789_s22  ;;  %v397_v2 = vld [vmem:[%s170_s15 + $0x4] sm:$0x3]  ;;  %v398_v5 = vld [vmem:[%s170_s15 + $0x6] sm:$0x3] }
  0x56   : > { %s237_s29 = sadd.s32 8, %s789_s22  ;;  %s208_s3 = sadd.s32 2, %s789_s22  ;;  %vm262_vm0 = vcmp.lt.s32.totalorder %v260_v38, 256 }
  0x57   : > { %s238_s19 = sld [smem:[#allocation2 + %s237_s29]]  ;;  %s241_s5 = sadd.s32 9, %s789_s22 }
  0x58   : > { %s246_s16 = sadd.s32 10, %s789_s22  ;;  %s242_s17 = sld [smem:[#allocation2 + %s241_s5]] }
  0x59   : > { %s247_s23 = sld [smem:[#allocation2 + %s246_s16]]  ;;  %s251_s28 = sadd.s32 11, %s789_s22 }
  0x5a   : > { %s799_s27 = sld [smem:[#allocation2 + %s203_s24]]  ;;  %s218_s8 = sadd.s32 4, %s789_s22 }
  0x5b   : > { %s802_s30 = sld [smem:[#allocation2 + %s208_s3]]  ;;  %s222_s26 = sadd.s32 5, %s789_s22  ;;  %v201_v11 = vstv %s792_s18 }
  0x5c   : > { %s252_s6 = sld [smem:[#allocation2 + %s251_s28]]  ;;  %s213_s5 = sadd.s32 3, %s789_s22  ;;  %v202_v18 = vmul.f32 %v201_v11, %v192_v0 }
  0x5d   : > { %v239_v3 = vstv %s238_s19  ;;  %s219_s29 = sld [smem:[#allocation2 + %s218_s8]]  ;;  %s227_s16 = sadd.s32 6, %s789_s22 }
  0x5e   : > { %s223_s0 = sld [smem:[#allocation2 + %s222_s26]]  ;;  %v240_v4 = vmul.f32 %v239_v3, %v192_v0  ;;  %v243_v6 = vstv %s242_s17  ;;  %s232_s3 = sadd.s32 7, %s789_s22 }
  0x5f   : > { %v248_v7 = vstv %s247_s23  ;;  %s228_s24 = sld [smem:[#allocation2 + %s227_s16]]  ;;  %v244_v8 = vmul.f32 %v396_v1, %v243_v6  ;;  %s395_s15 = sshll.u32 %s780_s7, 2 }
  0x60   : > { %v249_v9 = vmul.f32 %v397_v2, %v248_v7  ;;  %v205_v12 = vstv %s799_s27  ;;  %s214_s28 = sld [smem:[#allocation2 + %s213_s5]]  ;;  %s409_s18 = sshll.u32 %s610_s12, 6 }
  0x61   : > { %v245_v13 = vadd.f32 %v244_v8, %v240_v4  ;;  %s233_s19 = sld [smem:[#allocation2 + %s232_s3]]  ;;  %v206_v19 = vmul.f32 %v396_v1, %v205_v12  ;;  %v210_v22 = vstv %s802_s30  ;;  %s819_s27 = scalar_lea.hbm %s870_s2, %s409_s18 }
  0x62   : > { %v253_v10 = vstv %s252_s6  ;;  %v211_v27 = vmul.f32 %v397_v2, %v210_v22  ;;  %s270_s30 = scalar_lea.sflag [#allocation4], %s780_s7  ;;  %s624_s6 = smov [#allocation7]  }
  0x63   : > { %v254_v14 = vmul.f32 %v398_v5, %v253_v10  ;;  %v220_v15 = vstv %s219_s29  ;;  %v250_v17 = vadd.f32 %v249_v9, %v245_v13  ;;  %v207_v26 = vadd.f32 %v206_v19, %v202_v18  ;;  %s536_s8 = sshll.u32 %s624_s6, 4  ;;  %s537_s8 = int_to_ptr.vmem [resolvable:$false] %s536_s8 }
  0x64   : > { %v224_v16 = vstv %s223_s0  ;;  %v221_v20 = vmul.f32 %v220_v15, %v192_v0  ;;  %s191_s0 = scalar_lea.vmem [#allocation7], %s395_s15  ;;  %s538_s26 = scalar_lea.vmem %s537_s8, 128 }
  0x65   : > { %v225_v21 = vmul.f32 %v396_v1, %v224_v16  ;;  %v255_v23 = vadd.f32 %v254_v14, %v250_v17  ;;  %v229_v24 = vstv %s228_s24  ;;  %v212_v32 = vadd.f32 %v211_v27, %v207_v26  ;;  %s285_s22 = sshll.u32 %s191_s0, 4  ;;  %s814_s22 = int_to_ptr.vmem [resolvable:$true] %s285_s22 }
  0x66   : > { %v230_v29 = vmul.f32 %v397_v2, %v229_v24  ;;  %v215_v30 = vstv %s214_s28  ;;  %s532_s12 = scalar_lea.vmem %s814_s22, 64  ;;  %p539_p6 = scmp.lt.s32.totalorder %s814_s22, %s537_s8 }
  0x67   : > { %v256_v25 = vadd.f32 1e-07, %v255_v23  ;;  %v226_v28 = vadd.f32 %v225_v21, %v221_v20  ;;  %v234_v31 = vstv %s233_s19  ;;  %v216_v33 = vmul.f32 %v398_v5, %v215_v30  ;;  %p533_p8 = scmp.ne.s32.totalorder %s814_s22, %s532_s12  ;;  %p540_p1 = scmp.lt.s32.totalorder %s538_s26, %s532_s12 }
  0x68   : > { %v235_v35 = vmul.f32 %v398_v5, %v234_v31 }
  0x69   : > { %487 = vrcp.f32 %v256_v25  ;;  %v231_v34 = vadd.f32 %v230_v29, %v226_v28  ;;  %v217_v36 = vadd.f32 %v216_v33, %v212_v32  ;;  %p534_p0 = pnand %p533_p8, %p885_p13  ;;  %p541_p7 = por %p540_p1, %p539_p6 }
  0x6b   : > { %v236_v37 = vadd.f32 %v235_v35, %v231_v34  ;;  %p535_p2 = pneg %p534_p0 }
  0x6d   : > { %p542_p12 = pnand %p541_p7, %p535_p2 }
  0x73   : > { %v488_v39 = vpop.eup %487 }
  0x74   : > { %v258_v40 = vmul.f32 %v488_v39, %v217_v36  ;;  %v265_v41 = vmul.f32 %v488_v39, %v236_v37 }
  0x76   : > { %v400_v42 = vadd.f32 -1.0, %v258_v40  ;;  %v401_v43 = vadd.f32 -1.0, %v265_v41 }
  0x78   : > { %264 = vst.msk [vmem:[%s191_s0] sm:$0x3] %vm262_vm0, %v400_v42  ;;  %402 = vst.msk [vmem:[%s191_s0 + $0x2] sm:$0x3] %vm262_vm0, %v401_v43 }
  0x79   : > { %545 = shalt.err (!%p542_p12)
}
  0x7a   : > { %s546_s29 = scalar_lea.hbm %s819_s27, 64  ;;  %s550_s24 = scalar_lea.hbm %s870_s2, 128 }
  0x7b   : > { %p547_p4 = scmp.ne.s32.totalorder %s819_s27, %s546_s29  ;;  %p551_p5 = scmp.lt.u32.totalorder %s819_s27, %s870_s2 }
  0x7c   : > { %p552_p9 = scmp.lt.u32.totalorder %s550_s24, %s546_s29  ;;  %p554_p8 = scmp.lt.u32.totalorder %s546_s29, %s819_s27 }
  0x7d   : > { %p548_p10 = pnand %p547_p4, %p885_p13 }
  0x7e   : > { %p553_p3 = por %p552_p9, %p551_p5 }
  0x7f   : > { %p549_p11 = pneg %p548_p10 }
  0x80   : > { %p555_p0 = por %p554_p8, %p553_p3 }
  0x82   : > { %p556_p2 = pnand %p555_p0, %p549_p11 }
  0x84   : > { %559 = shalt.err (!%p556_p2)
}
  0x85   : > { %s625_s19 = smov 32   ;;  %s626_s15 = smov 2  }
  0x86   : > { %416 = dma.vmem_to_hbm [thread:$0]  (%p885_p13), %s814_s22, 64, %s819_s27, %s270_s30, %s625_s19, %s625_s19, %s626_s15  }
  0x87 PF: > { %s300_s0 = sand.u32 1, %s598_s9   ;;  %p886_p6 = scmp.ne.s32.totalorder %s879_s21, 0 }
  0x88   : > { %p887_p1 = scmp.ge.s32.totalorder %s618_s14, 2  ;;  %s301_s18 = scalar_lea.sflag [#allocation4], %s300_s0 }
  0x8a   : > { %p427_p7 = pnand %p887_p1, %p886_p6 }
  0x8c   : > { %593 = dma.done.wait (!%p427_p7), %s301_s18, 64  }
  0x8d   : > { %595 = vsyncadd (!%p427_p7), %s301_s18, 4294967232  ;;  %s19_s14 = sadd.s32 1, %s618_s14   ;;  %s888_s9 = smov %s602_s10 }
  0x8e   : > { %p16_p12 = scmp.ge.s32.totalorder %s19_s14, 4   ;;  %s889_s10 = smov %s606_s11 }
  0x8f   : > { %s890_s11 = smov %s743_s4  ;;  %s891_s12 = smov %s614_s13 }
  0x90   : > { %s892_s13 = smov %s894_s25  ;;  %18 = sbr.rel (!%p16_p12) target bundleno = 9 (0x9), region = 82 }
  0x97   :  { %306 = vsyncpa [#allocation3], 1 }
  0x98   :  { %308 = vsyncpa [#allocation3 + $0x1], 1 }
  0x99   :  { %309 = vsyncpa [#allocation4], 1 }
  0x9a   :  { %311 = vsyncpa [#allocation4 + $0x1], 1 }
  0x9b   :  { %312 = vsyncpa [#allocation5], 1 }
  0x9c   :  { %314 = vsyncpa [#allocation5 + $0x1], 1 }

</bundles_post_ra>
